<compile_context>
chip_gen: v7x
topology: tpu7x:2x2x1
jax: 0.10.0
libtpu: 0.0.40
codegen_flags: <defaults>
</compile_context>

<pallas_src>
import functools

import jax
import jax.numpy as jnp
from jax.experimental import pallas as pl
from jax.experimental.pallas import tpu as pltpu

LN_EPS = 1e-5
_SQRT_2_OVER_PI = 0.7978845608028654


def _cdiv(a, b):
    return -(-a // b)


def _round_up(x, m):
    return ((x + m - 1) // m) * m


def _gelu_tanh(x):
    # torch nn.GELU(approximate='tanh'):  0.5*x*(1 + tanh(c*(x + 0.044715 x^3)))
    # == x * sigmoid(2c*(x + 0.044715 x^3))  (exact identity; one EUP op, fewer VALU).
    z = (2.0 * _SQRT_2_OVER_PI) * (x + 0.044715 * (x * x * x))
    return x * jax.nn.sigmoid(z)


def _mlp_kernel(x_ref, w1_ref, b1_ref, w2_ref, cs2_ref, b2_ref, o_ref,
                xhat_ref, acc_ref, ssum_ref, ssq_ref, *, d_true, h_true):
    # Grid: (row tiles ["parallel"], H chunks ["arbitrary", last]).
    j = pl.program_id(1)
    w_dtype = w1_ref.dtype

    @pl.when(j == 0)
    def _init():
        x = x_ref[...].astype(jnp.float32)
        # One-pass LN1 stats over the TRUE feature width (padded cols are zero
        # so they don't perturb the sums; the divisor must still be d_true).
        s = jnp.sum(x, axis=-1, keepdims=True)
        sq = jnp.sum(x * x, axis=-1, keepdims=True)
        mu = s * (1.0 / d_true)
        var = sq * (1.0 / d_true) - mu * mu
        xhat_ref[...] = ((x - mu) * jax.lax.rsqrt(var + LN_EPS)).astype(w_dtype)
        acc_ref[...] = jnp.zeros_like(acc_ref)
        ssum_ref[...] = jnp.zeros_like(ssum_ref)
        ssq_ref[...] = jnp.zeros_like(ssq_ref)

    # h chunk = GELU(xhat @ W1'[:, chunk] + bias1[chunk])   (f32 accumulation)
    h = jnp.dot(xhat_ref[...], w1_ref[...], preferred_element_type=jnp.float32)
    h = h + b1_ref[...]
    h = _gelu_tanh(h)

    # Running LN2 statistics (true-H divisor applied at finalize).
    ssum_ref[...] += jnp.sum(h, axis=-1, keepdims=True)
    ssq_ref[...] += jnp.sum(h * h, axis=-1, keepdims=True)

    # proj2 partial:  acc += h_chunk @ W2'[chunk, :]
    acc_ref[...] += jnp.dot(h.astype(w_dtype), w2_ref[...],
                            preferred_element_type=jnp.float32)

    @pl.when(j == pl.num_programs(1) - 1)
    def _finalize():
        mu2 = ssum_ref[...] * (1.0 / h_true)
        var2 = ssq_ref[...] * (1.0 / h_true) - mu2 * mu2
        r2 = jax.lax.rsqrt(var2 + LN_EPS)
        # ((h - mu2) * r2) @ W2'  ==  r2 * (h @ W2')  -  r2 * mu2 * colsum(W2')
        out = r2 * (acc_ref[...] - mu2 * cs2_ref[...]) + b2_ref[...]
        o_ref[...] = out.astype(o_ref.dtype)


def _vmem_budget_bytes():
    # Generation-aware VMEM budget (v5e/v6e: 128 MiB, v7x: 64 MiB per TC).
    cap = 64 << 20  # conservative fallback
    try:
        info = pltpu.get_tpu_info()
        cap = int(getattr(info, "vmem_capacity_bytes", cap))
    except Exception:
        pass
    # ~85% of physical leaves headroom for compiler-internal scratch.
    return max(32 << 20, int(cap * 0.85))


def _plan_tiling(rows, d_pad, h_pad, x_item, w_item, budget):
    """Pick (row_tile, n_row_tiles, rows_padded, h_tile)."""
    # Row tile: minimize zero-padded rows; keep a multiple of 16 sublanes; keep
    # at least 2 grid steps so v7x megacore shards the row axis across both TCs.
    target_rows = 512 if budget >= (96 << 20) else 256
    nt = max(1, _cdiv(rows, target_rows))
    if nt == 1 and rows >= 32:
        nt = 2
    row_tile = _round_up(max(_cdiv(rows, nt), 16), 16)

    def need(tm, th, wbuf):
        scratch = tm * d_pad * (w_item + 4) + 8 * tm          # xhat + acc + sums
        io = 4 * tm * d_pad * x_item                          # x/out, double-buffered
        wts = wbuf * 2 * d_pad * th * w_item                  # W1' + W2' (chunks)
        vecs = 4 * (h_pad + d_pad) * 4                        # bias/colsum rows
        live = 3 * tm * th * 4                                # live f32 (tm, th) temps
        return scratch + io + wts + vecs + live

    while True:
        if need(row_tile, h_pad, 1) <= budget:
            h_tile = h_pad                                    # weights fully resident
            break
        h_tile = None
        n128 = h_pad // 128
        for c in range(2, n128 + 1):                          # stream H in chunks
            if n128 % c:
                continue
            th = h_pad // c                                   # multiple of 128
            if need(row_tile, th, 2) <= budget:
                h_tile = th
                break
        if h_tile is not None:
            break
        if row_tile <= 16:
            h_tile = 128                                      # last resort
            break
        row_tile = _round_up(max(16, row_tile // 2), 16)

    n_row = _cdiv(rows, row_tile)
    return row_tile, n_row, n_row * row_tile, h_tile


def mlp_forward(x, params, *, h_tile=None):
    """x: (B, N, D).  params: dict g1,b1,w1,g2,b2,w2 (weights may be bf16)."""
    B, N, D = x.shape
    H = 4 * D
    rows = B * N

    w1 = params["w1"]  # (D, 4D)  == torch proj1.weight.T
    w2 = params["w2"]  # (4D, D)  == torch proj2.weight.T
    w_dtype = w1.dtype
    g1 = params["g1"].astype(jnp.float32)
    b1 = params["b1"].astype(jnp.float32)
    g2 = params["g2"].astype(jnp.float32)
    b2 = params["b2"].astype(jnp.float32)

    # Fold the LN affine into the projection weights (one-time, wrapper-side):
    #   (xhat*g + b) @ W  =  xhat @ (diag(g) W)  +  b @ W
    w1f = (w1.astype(jnp.float32) * g1[:, None]).astype(w_dtype)
    bias1 = b1 @ w1.astype(jnp.float32)                          # (H,)
    w2f = (w2.astype(jnp.float32) * g2[:, None]).astype(w_dtype)
    bias2 = b2 @ w2.astype(jnp.float32)                          # (D,)
    colsum2 = jnp.sum(w2f.astype(jnp.float32), axis=0)           # (D,)

    # Lane-dense padding of feature dims (zero pad; LN divisors use true widths,
    # padded weight rows/cols are zero so results are unchanged).
    d_pad = _round_up(D, 128)
    h_pad = _round_up(H, 128)

    x_item = jnp.dtype(x.dtype).itemsize
    w_item = jnp.dtype(w_dtype).itemsize
    budget = _vmem_budget_bytes()
    row_tile, n_row, rows_padded, h_tile_auto = _plan_tiling(
        rows, d_pad, h_pad, x_item, w_item, budget)
    if h_tile is None:
        h_tile = h_tile_auto
    n_h = h_pad // h_tile

    x2d = x.reshape(rows, D)
    x2d = jnp.pad(x2d, ((0, rows_padded - rows), (0, d_pad - D)))
    w1f = jnp.pad(w1f, ((0, d_pad - D), (0, h_pad - H)))
    w2f = jnp.pad(w2f, ((0, h_pad - H), (0, d_pad - D)))
    bias1 = jnp.pad(bias1, (0, h_pad - H)).reshape(1, h_pad)
    bias2 = jnp.pad(bias2, (0, d_pad - D)).reshape(1, d_pad)
    colsum2 = jnp.pad(colsum2, (0, d_pad - D)).reshape(1, d_pad)

    kernel = functools.partial(_mlp_kernel, d_true=float(D), h_true=float(H))

    single = pl.Buffered(1)   # grid-invariant operands: no double-buffering

    def w_spec(shape, imap):
        if n_h == 1:
            return pl.BlockSpec(shape, imap, pipeline_mode=single)
        return pl.BlockSpec(shape, imap)      # streamed: default double-buffering

    flops = 4 * rows_padded * d_pad * h_pad + 20 * rows_padded * h_pad
    w_reads = 1 if n_h == 1 else n_row        # streamed weights re-read per row tile
    bytes_accessed = (2 * rows_padded * d_pad * x_item
                      + w_reads * 2 * d_pad * h_pad * w_item
                      + (2 * h_pad + 2 * d_pad) * 4)

    out2d = pl.pallas_call(
        kernel,
        out_shape=jax.ShapeDtypeStruct((rows_padded, d_pad), x.dtype),
        grid_spec=pltpu.PrefetchScalarGridSpec(
            num_scalar_prefetch=0,
            grid=(n_row, n_h),
            in_specs=[
                pl.BlockSpec((row_tile, d_pad), lambda i, j: (i, 0)),   # x rows
                w_spec((d_pad, h_tile), lambda i, j: (0, j)),           # W1' chunk
                w_spec((1, h_tile), lambda i, j: (0, j)),               # bias1 chunk
                w_spec((h_tile, d_pad), lambda i, j: (j, 0)),           # W2' chunk
                pl.BlockSpec((1, d_pad), lambda i, j: (0, 0),
                             pipeline_mode=single),                     # colsum(W2')
                pl.BlockSpec((1, d_pad), lambda i, j: (0, 0),
                             pipeline_mode=single),                     # bias2
            ],
            out_specs=pl.BlockSpec((row_tile, d_pad), lambda i, j: (i, 0)),
            scratch_shapes=[
                pltpu.VMEM((row_tile, d_pad), w_dtype),       # LN1 output (xhat)
                pltpu.VMEM((row_tile, d_pad), jnp.float32),   # proj2 accumulator
                pltpu.VMEM((row_tile, 1), jnp.float32),       # LN2 running sum
                pltpu.VMEM((row_tile, 1), jnp.float32),       # LN2 running sum-of-squares
            ],
        ),
        compiler_params=pltpu.CompilerParams(
            dimension_semantics=("parallel", "arbitrary"),
            vmem_limit_bytes=budget,
        ),
        cost_estimate=pl.CostEstimate(
            flops=flops,
            transcendentals=rows_padded * h_pad,
            bytes_accessed=bytes_accessed,
        ),
    )(x2d, w1f, bias1, w2f, colsum2, bias2)

    out2d = out2d[:rows, :D]
    return out2d.reshape(B, N, D)


def init_params(key, hidden_size, *, w_dtype=jnp.bfloat16):
    """Synthetic parameters matching MLP.__init__ shapes.

    torch Linear(d, 4d).weight is (4d, d); we store its transpose so the kernel
    computes x @ W.  gamma is a learned parameter (non-trivial here so the
    LN-affine folding is exercised); beta is the module's zero buffer.
    """
    D = hidden_size
    H = 4 * D
    k1, k2, k3, k4 = jax.random.split(key, 4)
    s1 = 1.0 / jnp.sqrt(D)
    s2 = 1.0 / jnp.sqrt(H)
    return {
        "g1": 1.0 + 0.1 * jax.random.normal(k3, (D,), jnp.float32),
        "b1": jnp.zeros((D,), jnp.float32),
        "w1": jax.random.uniform(k1, (D, H), jnp.float32, -s1, s1).astype(w_dtype),
        "g2": 1.0 + 0.1 * jax.random.normal(k4, (H,), jnp.float32),
        "b2": jnp.zeros((H,), jnp.float32),
        "w2": jax.random.uniform(k2, (H, D), jnp.float32, -s2, s2).astype(w_dtype),
    }


def mlp_ref(x, params):
    """Pure-JAX reference mirroring the torch module (f32 LN, bf16 MXU dots)."""
    w_dtype = params["w1"].dtype

    def ln(v, g, b):
        mu = jnp.mean(v, axis=-1, keepdims=True)
        var = jnp.mean(jnp.square(v - mu), axis=-1, keepdims=True)
        return (v - mu) * jax.lax.rsqrt(var + LN_EPS) * g + b

    h = ln(x.astype(jnp.float32), params["g1"], params["b1"])
    h = jnp.dot(h.astype(w_dtype), params["w1"], preferred_element_type=jnp.float32)
    h = _gelu_tanh(h)
    h = ln(h, params["g2"], params["b2"])
    out = jnp.dot(h.astype(w_dtype), params["w2"], preferred_element_type=jnp.float32)
    return out.astype(x.dtype)


if __name__ == "__main__":
    key = jax.random.PRNGKey(0)
    kx, kp, kx2, kx3 = jax.random.split(key, 4)

    # (batch, h*w tokens, hidden_size) -- matches the torch module's (b, h*w, d).
    B, HW, D = 2, 64, 32
    x = jax.random.normal(kx, (B, HW, D), jnp.float32)
    params = init_params(kp, D)

    out = mlp_forward(x, params)
    jax.block_until_ready(out)
    ref = mlp_ref(x, params)
    assert out.shape == (B, HW, D)
    assert jnp.allclose(out, ref, atol=2e-2, rtol=2e-2), float(jnp.max(jnp.abs(out - ref)))

    # Ragged row count exercises the row-padding path.
    x2 = jax.random.normal(kx2, (1, 50, D), jnp.float32)
    out2 = mlp_forward(x2, params)
    jax.block_until_ready(out2)
    ref2 = mlp_ref(x2, params)
    assert out2.shape == (1, 50, D)
    assert jnp.allclose(out2, ref2, atol=2e-2, rtol=2e-2), float(jnp.max(jnp.abs(out2 - ref2)))

    # Force the weight-streaming path (H split into 2 chunks) at small scale.
    D3 = 64
    params3 = init_params(jax.random.PRNGKey(1), D3)
    x3 = jax.random.normal(kx3, (2, 40, D3), jnp.float32)
    out3 = mlp_forward(x3, params3, h_tile=128)
    jax.block_until_ready(out3)
    ref3 = mlp_ref(x3, params3)
    assert out3.shape == (2, 40, D3)
    assert jnp.allclose(out3, ref3, atol=2e-2, rtol=2e-2), float(jnp.max(jnp.abs(out3 - ref3)))

    print("KERNEL_OK")
</pallas_src>

<mosaic_0001>
module attributes {stable_mosaic.version = 11 : i64} {
  func.func @_mlp_kernel(%arg0: i32, %arg1: i32, %arg2: memref<64x128xf32, #tpu.memory_space<vmem>>, %arg3: memref<128x128xbf16, #tpu.memory_space<vmem>>, %arg4: memref<1x128xf32, #tpu.memory_space<vmem>>, %arg5: memref<128x128xbf16, #tpu.memory_space<vmem>>, %arg6: memref<1x128xf32, #tpu.memory_space<vmem>>, %arg7: memref<1x128xf32, #tpu.memory_space<vmem>>, %arg8: memref<64x128xf32, #tpu.memory_space<vmem>>, %arg9: memref<64x128xbf16, #tpu.memory_space<vmem>>, %arg10: memref<64x128xf32, #tpu.memory_space<vmem>>, %arg11: memref<64x1xf32, #tpu.memory_space<vmem>>, %arg12: memref<64x1xf32, #tpu.memory_space<vmem>>) attributes {dimension_semantics = [#tpu.dimension_semantics<parallel>, #tpu.dimension_semantics<arbitrary>], iteration_bounds = array<i64: 2, 1>, scalar_prefetch = 0 : i64, scratch_operands = 4 : i64, tpu.core_type = #tpu.core_type<tc>, window_params = [{transform_indices = @transform_0, window_bounds = array<i64: 64, 128>}, {pipeline_mode = #tpu.pipeline_mode<synchronous>, transform_indices = @transform_1, window_bounds = array<i64: 128, 128>}, {pipeline_mode = #tpu.pipeline_mode<synchronous>, transform_indices = @transform_2, window_bounds = array<i64: 1, 128>}, {pipeline_mode = #tpu.pipeline_mode<synchronous>, transform_indices = @transform_3, window_bounds = array<i64: 128, 128>}, {pipeline_mode = #tpu.pipeline_mode<synchronous>, transform_indices = @transform_4, window_bounds = array<i64: 1, 128>}, {pipeline_mode = #tpu.pipeline_mode<synchronous>, transform_indices = @transform_5, window_bounds = array<i64: 1, 128>}, {transform_indices = @transform_6, window_bounds = array<i64: 64, 128>}]} {
    %c0_i32 = arith.constant 0 : i32
    %0 = arith.cmpi eq, %arg1, %c0_i32 : i32
    %1 = arith.extui %0 : i1 to i32
    %c0_i32_0 = arith.constant 0 : i32
    %2 = arith.cmpi ne, %1, %c0_i32_0 : i32
    scf.if %2 {
      %c0_28 = arith.constant 0 : index
      %c0_29 = arith.constant 0 : index
      %42 = vector.load %arg2[%c0_28, %c0_29] : memref<64x128xf32, #tpu.memory_space<vmem>>, vector<64x128xf32>
      %cst_30 = arith.constant dense<0.000000e+00> : vector<64xf32>
      %43 = vector.multi_reduction <add>, %42, %cst_30 [1] : vector<64x128xf32> to vector<64xf32>
      %44 = vector.shape_cast %43 : vector<64xf32> to vector<64x1xf32>
      %45 = arith.mulf %42, %42 : vector<64x128xf32>
      %cst_31 = arith.constant dense<0.000000e+00> : vector<64xf32>
      %46 = vector.multi_reduction <add>, %45, %cst_31 [1] : vector<64x128xf32> to vector<64xf32>
      %47 = vector.shape_cast %46 : vector<64xf32> to vector<64x1xf32>
      %cst_32 = arith.constant 3.125000e-02 : f32
      %48 = vector.broadcast %cst_32 : f32 to vector<64x1xf32>
      %49 = arith.mulf %44, %48 : vector<64x1xf32>
      %cst_33 = arith.constant 3.125000e-02 : f32
      %50 = vector.broadcast %cst_33 : f32 to vector<64x1xf32>
      %51 = arith.mulf %47, %50 : vector<64x1xf32>
      %52 = arith.mulf %49, %49 : vector<64x1xf32>
      %53 = arith.subf %51, %52 : vector<64x1xf32>
      %54 = vector.broadcast %49 : vector<64x1xf32> to vector<64x128xf32>
      %55 = arith.subf %42, %54 : vector<64x128xf32>
      %cst_34 = arith.constant 9.99999974E-6 : f32
      %56 = vector.broadcast %cst_34 : f32 to vector<64x1xf32>
      %57 = arith.addf %53, %56 : vector<64x1xf32>
      %58 = math.rsqrt %57 : vector<64x1xf32>
      %59 = vector.broadcast %58 : vector<64x1xf32> to vector<64x128xf32>
      %60 = arith.mulf %55, %59 : vector<64x128xf32>
      %61 = arith.truncf %60 : vector<64x128xf32> to vector<64x128xbf16>
      %c0_35 = arith.constant 0 : index
      %c0_36 = arith.constant 0 : index
      %62 = vector.load %arg9[%c0_35, %c0_36] : memref<64x128xbf16, #tpu.memory_space<vmem>>, vector<64x128xbf16>
      tpu.vector_store %arg9[%c0_35, %c0_36], %61 {strides = array<i32>} : memref<64x128xbf16, #tpu.memory_space<vmem>>, vector<64x128xbf16>,
      %cst_37 = arith.constant 0.000000e+00 : f32
      %63 = vector.broadcast %cst_37 : f32 to vector<64x128xf32>
      %c0_38 = arith.constant 0 : index
      %c0_39 = arith.constant 0 : index
      %64 = vector.load %arg10[%c0_38, %c0_39] : memref<64x128xf32, #tpu.memory_space<vmem>>, vector<64x128xf32>
      tpu.vector_store %arg10[%c0_38, %c0_39], %63 {strides = array<i32>} : memref<64x128xf32, #tpu.memory_space<vmem>>, vector<64x128xf32>,
      %cst_40 = arith.constant 0.000000e+00 : f32
      %65 = vector.broadcast %cst_40 : f32 to vector<64x1xf32>
      %c0_41 = arith.constant 0 : index
      %c0_42 = arith.constant 0 : index
      %66 = vector.load %arg11[%c0_41, %c0_42] : memref<64x1xf32, #tpu.memory_space<vmem>>, vector<64x1xf32>
      tpu.vector_store %arg11[%c0_41, %c0_42], %65 {strides = array<i32>} : memref<64x1xf32, #tpu.memory_space<vmem>>, vector<64x1xf32>,
      %cst_43 = arith.constant 0.000000e+00 : f32
      %67 = vector.broadcast %cst_43 : f32 to vector<64x1xf32>
      %c0_44 = arith.constant 0 : index
      %c0_45 = arith.constant 0 : index
      %68 = vector.load %arg12[%c0_44, %c0_45] : memref<64x1xf32, #tpu.memory_space<vmem>>, vector<64x1xf32>
      tpu.vector_store %arg12[%c0_44, %c0_45], %67 {strides = array<i32>} : memref<64x1xf32, #tpu.memory_space<vmem>>, vector<64x1xf32>,
    } else {
    }
    %c0 = arith.constant 0 : index
    %c0_1 = arith.constant 0 : index
    %3 = vector.load %arg9[%c0, %c0_1] : memref<64x128xbf16, #tpu.memory_space<vmem>>, vector<64x128xbf16>
    %c0_2 = arith.constant 0 : index
    %c0_3 = arith.constant 0 : index
    %4 = vector.load %arg3[%c0_2, %c0_3] : memref<128x128xbf16, #tpu.memory_space<vmem>>, vector<128x128xbf16>
    %cst = arith.constant dense<0.000000e+00> : vector<64x128xf32>
    %5 = tpu.matmul %3, %4, %cst {dimension_numbers = #tpu.dot_dimension_numbers<[1], [0], [0], [1], [0, 0, 1, 1], [], []>} : vector<64x128xbf16>, vector<128x128xbf16>, vector<64x128xf32> -> vector<64x128xf32>
    %c0_4 = arith.constant 0 : index
    %c0_5 = arith.constant 0 : index
    %6 = vector.load %arg4[%c0_4, %c0_5] : memref<1x128xf32, #tpu.memory_space<vmem>>, vector<1x128xf32>
    %7 = vector.broadcast %6 : vector<1x128xf32> to vector<64x128xf32>
    %8 = arith.addf %5, %7 : vector<64x128xf32>
    %9 = arith.mulf %8, %8 : vector<64x128xf32>
    %10 = arith.mulf %9, %8 : vector<64x128xf32>
    %cst_6 = arith.constant 4.471500e-02 : f32
    %11 = vector.broadcast %cst_6 : f32 to vector<64x128xf32>
    %12 = arith.mulf %11, %10 : vector<64x128xf32>
    %13 = arith.addf %8, %12 : vector<64x128xf32>
    %cst_7 = arith.constant 1.59576917 : f32
    %14 = vector.broadcast %cst_7 : f32 to vector<64x128xf32>
    %15 = arith.mulf %14, %13 : vector<64x128xf32>
    %16 = arith.negf %15 : vector<64x128xf32>
    %17 = math.exp %16 : vector<64x128xf32>
    %cst_8 = arith.constant 1.000000e+00 : f32
    %18 = vector.broadcast %cst_8 : f32 to vector<64x128xf32>
    %19 = arith.addf %18, %17 : vector<64x128xf32>
    %20 = arith.divf %18, %19 : vector<64x128xf32>
    %21 = arith.mulf %8, %20 : vector<64x128xf32>
    %c0_9 = arith.constant 0 : index
    %c0_10 = arith.constant 0 : index
    %22 = vector.load %arg11[%c0_9, %c0_10] : memref<64x1xf32, #tpu.memory_space<vmem>>, vector<64x1xf32>
    %cst_11 = arith.constant dense<0.000000e+00> : vector<64xf32>
    %23 = vector.multi_reduction <add>, %21, %cst_11 [1] : vector<64x128xf32> to vector<64xf32>
    %24 = vector.shape_cast %23 : vector<64xf32> to vector<64x1xf32>
    %25 = arith.addf %22, %24 : vector<64x1xf32>
    %c0_12 = arith.constant 0 : index
    %c0_13 = arith.constant 0 : index
    %26 = vector.load %arg11[%c0_12, %c0_13] : memref<64x1xf32, #tpu.memory_space<vmem>>, vector<64x1xf32>
    tpu.vector_store %arg11[%c0_12, %c0_13], %25 {strides = array<i32>} : memref<64x1xf32, #tpu.memory_space<vmem>>, vector<64x1xf32>,
    %c0_14 = arith.constant 0 : index
    %c0_15 = arith.constant 0 : index
    %27 = vector.load %arg12[%c0_14, %c0_15] : memref<64x1xf32, #tpu.memory_space<vmem>>, vector<64x1xf32>
    %28 = arith.mulf %21, %21 : vector<64x128xf32>
    %cst_16 = arith.constant dense<0.000000e+00> : vector<64xf32>
    %29 = vector.multi_reduction <add>, %28, %cst_16 [1] : vector<64x128xf32> to vector<64xf32>
    %30 = vector.shape_cast %29 : vector<64xf32> to vector<64x1xf32>
    %31 = arith.addf %27, %30 : vector<64x1xf32>
    %c0_17 = arith.constant 0 : index
    %c0_18 = arith.constant 0 : index
    %32 = vector.load %arg12[%c0_17, %c0_18] : memref<64x1xf32, #tpu.memory_space<vmem>>, vector<64x1xf32>
    tpu.vector_store %arg12[%c0_17, %c0_18], %31 {strides = array<i32>} : memref<64x1xf32, #tpu.memory_space<vmem>>, vector<64x1xf32>,
    %c0_19 = arith.constant 0 : index
    %c0_20 = arith.constant 0 : index
    %33 = vector.load %arg10[%c0_19, %c0_20] : memref<64x128xf32, #tpu.memory_space<vmem>>, vector<64x128xf32>
    %34 = arith.truncf %21 : vector<64x128xf32> to vector<64x128xbf16>
    %c0_21 = arith.constant 0 : index
    %c0_22 = arith.constant 0 : index
    %35 = vector.load %arg5[%c0_21, %c0_22] : memref<128x128xbf16, #tpu.memory_space<vmem>>, vector<128x128xbf16>
    %cst_23 = arith.constant dense<0.000000e+00> : vector<64x128xf32>
    %36 = tpu.matmul %34, %35, %cst_23 {dimension_numbers = #tpu.dot_dimension_numbers<[1], [0], [0], [1], [0, 0, 1, 1], [], []>} : vector<64x128xbf16>, vector<128x128xbf16>, vector<64x128xf32> -> vector<64x128xf32>
    %37 = arith.addf %33, %36 : vector<64x128xf32>
    %c0_24 = arith.constant 0 : index
    %c0_25 = arith.constant 0 : index
    %38 = vector.load %arg10[%c0_24, %c0_25] : memref<64x128xf32, #tpu.memory_space<vmem>>, vector<64x128xf32>
    tpu.vector_store %arg10[%c0_24, %c0_25], %37 {strides = array<i32>} : memref<64x128xf32, #tpu.memory_space<vmem>>, vector<64x128xf32>,
    %c0_i32_26 = arith.constant 0 : i32
    %39 = arith.cmpi eq, %arg1, %c0_i32_26 : i32
    %40 = arith.extui %39 : i1 to i32
    %c0_i32_27 = arith.constant 0 : i32
    %41 = arith.cmpi ne, %40, %c0_i32_27 : i32
    scf.if %41 {
      %c0_28 = arith.constant 0 : index
      %c0_29 = arith.constant 0 : index
      %42 = vector.load %arg11[%c0_28, %c0_29] : memref<64x1xf32, #tpu.memory_space<vmem>>, vector<64x1xf32>
      %cst_30 = arith.constant 7.812500e-03 : f32
      %43 = vector.broadcast %cst_30 : f32 to vector<64x1xf32>
      %44 = arith.mulf %42, %43 : vector<64x1xf32>
      %c0_31 = arith.constant 0 : index
      %c0_32 = arith.constant 0 : index
      %45 = vector.load %arg12[%c0_31, %c0_32] : memref<64x1xf32, #tpu.memory_space<vmem>>, vector<64x1xf32>
      %cst_33 = arith.constant 7.812500e-03 : f32
      %46 = vector.broadcast %cst_33 : f32 to vector<64x1xf32>
      %47 = arith.mulf %45, %46 : vector<64x1xf32>
      %48 = arith.mulf %44, %44 : vector<64x1xf32>
      %49 = arith.subf %47, %48 : vector<64x1xf32>
      %cst_34 = arith.constant 9.99999974E-6 : f32
      %50 = vector.broadcast %cst_34 : f32 to vector<64x1xf32>
      %51 = arith.addf %49, %50 : vector<64x1xf32>
      %52 = math.rsqrt %51 : vector<64x1xf32>
      %c0_35 = arith.constant 0 : index
      %c0_36 = arith.constant 0 : index
      %53 = vector.load %arg10[%c0_35, %c0_36] : memref<64x128xf32, #tpu.memory_space<vmem>>, vector<64x128xf32>
      %c0_37 = arith.constant 0 : index
      %c0_38 = arith.constant 0 : index
      %54 = vector.load %arg6[%c0_37, %c0_38] : memref<1x128xf32, #tpu.memory_space<vmem>>, vector<1x128xf32>
      %55 = vector.broadcast %44 : vector<64x1xf32> to vector<64x128xf32>
      %56 = vector.broadcast %54 : vector<1x128xf32> to vector<64x128xf32>
      %57 = arith.mulf %55, %56 : vector<64x128xf32>
      %58 = arith.subf %53, %57 : vector<64x128xf32>
      %59 = vector.broadcast %52 : vector<64x1xf32> to vector<64x128xf32>
      %60 = arith.mulf %59, %58 : vector<64x128xf32>
      %c0_39 = arith.constant 0 : index
      %c0_40 = arith.constant 0 : index
      %61 = vector.load %arg7[%c0_39, %c0_40] : memref<1x128xf32, #tpu.memory_space<vmem>>, vector<1x128xf32>
      %62 = vector.broadcast %61 : vector<1x128xf32> to vector<64x128xf32>
      %63 = arith.addf %60, %62 : vector<64x128xf32>
      %c0_41 = arith.constant 0 : index
      %c0_42 = arith.constant 0 : index
      %64 = vector.load %arg8[%c0_41, %c0_42] : memref<64x128xf32, #tpu.memory_space<vmem>>, vector<64x128xf32>
      tpu.vector_store %arg8[%c0_41, %c0_42], %63 {strides = array<i32>} : memref<64x128xf32, #tpu.memory_space<vmem>>, vector<64x128xf32>,
    } else {
    }
    return
  }
  func.func @transform_0(%arg0: i32, %arg1: i32) -> (i32, i32) {
    %c0_i32 = arith.constant 0 : i32
    %c0_i32_0 = arith.constant 0 : i32
    return %arg0, %c0_i32 : i32, i32
  }
  func.func @transform_1(%arg0: i32, %arg1: i32) -> (i32, i32) {
    %c0_i32 = arith.constant 0 : i32
    %c0_i32_0 = arith.constant 0 : i32
    return %c0_i32, %arg1 : i32, i32
  }
  func.func @transform_2(%arg0: i32, %arg1: i32) -> (i32, i32) {
    %c0_i32 = arith.constant 0 : i32
    %c0_i32_0 = arith.constant 0 : i32
    return %c0_i32, %arg1 : i32, i32
  }
  func.func @transform_3(%arg0: i32, %arg1: i32) -> (i32, i32) {
    %c0_i32 = arith.constant 0 : i32
    %c0_i32_0 = arith.constant 0 : i32
    return %arg1, %c0_i32 : i32, i32
  }
  func.func @transform_4(%arg0: i32, %arg1: i32) -> (i32, i32) {
    %c0_i32 = arith.constant 0 : i32
    %c0_i32_0 = arith.constant 0 : i32
    %c0_i32_1 = arith.constant 0 : i32
    return %c0_i32, %c0_i32_0 : i32, i32
  }
  func.func @transform_5(%arg0: i32, %arg1: i32) -> (i32, i32) {
    %c0_i32 = arith.constant 0 : i32
    %c0_i32_0 = arith.constant 0 : i32
    %c0_i32_1 = arith.constant 0 : i32
    return %c0_i32, %c0_i32_0 : i32, i32
  }
  func.func @transform_6(%arg0: i32, %arg1: i32) -> (i32, i32) {
    %c0_i32 = arith.constant 0 : i32
    %c0_i32_0 = arith.constant 0 : i32
    return %arg0, %c0_i32 : i32, i32
  }
}

</mosaic_0001>

<bundles_post_ra>
// kernel: tpu_custom_call.1
= control target key start
LH: loop header
LB: loop body
LE: loop exit
PB: predicated region body
PF: predicated region fallthrough
CT: control target
= control target key end

     0   :  { %11 = vsyncpa [#allocation7], 0  ;;  %s2249_s0 = inlined_call_operand.hbm [shape: f32[128,128], index: 0, kind: input, shape index: {}]   ;;  %s2250_s1 = inlined_call_operand.hbm [shape: bf16[128,128], index: 1, kind: input, shape index: {}]   ;;  %s2251_s2 = inlined_call_operand.vmem [shape: f32[1,128], index: 2, kind: input, shape index: {}]   ;;  %s2252_s3 = inlined_call_operand.hbm [shape: bf16[128,128], index: 3, kind: input, shape index: {}]   ;;  %s2253_s4 = inlined_call_operand.vmem [shape: f32[1,128], index: 4, kind: input, shape index: {}]   ;;  %s2254_s5 = inlined_call_operand.vmem [shape: f32[1,128], index: 5, kind: input, shape index: {}]   ;;  %s2255_s6 = inlined_call_operand.hbm [shape: f32[128,128], index: 6, kind: output, shape index: {}]  }
   0x1   :  { %13 = vsyncpa [#allocation7 + $0x1], 0 }
   0x2   :  { %14 = vsyncpa [#allocation10], 0 }
   0x3   :  { %15 = vsyncpa [#allocation8], 0 }
   0x4   :  { %17 = vsyncpa [#allocation8 + $0x1], 0  ;;  %s1829_s21 = smov 0   ;;  %s1831_s22 = smov 0  }
   0x5   :  { %s1833_s23 = smov 0   ;;  %s1835_s24 = smov 0  }
   0x6   :  { %s1837_s25 = smov 0   ;;  %s1839_s26 = smov 0  }
   0x7 LB: > { %s1314_s27 = sadd.s32 4294967295, %s1780_s26   ;;  %s1315_s28 = sadd.s32 4294967294, %s1780_s26   ;;  %s1780_s26 = sphi %s1839_s26, %s23_s26   ;;  %s1776_s25 = sphi %s1837_s25, %s2280_s25   ;;  %s1772_s24 = sphi %s1835_s24, %s2279_s24   ;;  %s1768_s23 = sphi %s1833_s23, %s2278_s23   ;;  %s1764_s22 = sphi %s1831_s22, %s2277_s22   ;;  %s1760_s21 = sphi %s1829_s21, %s2276_s21  }
   0x8   : > { %p55_p0 = scmp.ne.s32.totalorder %s1764_s22, %s1760_s21  ;;  %p1863_p1 = scmp.eq.s32.totalorder %s1314_s27, 0 }
   0x9   : > { %p1867_p2 = scmp.eq.s32.totalorder %s1314_s27, 1  ;;  %p205_p3 = scmp.eq.s32.totalorder %s1315_s28, 1 }
   0xa   : > { %s2261_s29 = scalar_select %p1863_p1, 1, 0 }
   0xb   : > { %p1873_p4 = por %p1863_p1, %p55_p0  ;;  %p1316_p5 = scmp.ge.s32.totalorder %s1780_s26, 1 }
   0xc   : > { %p1878_p6 = por %p205_p3, %p55_p0  ;;  %p212_p7 = scmp.lt.s32.totalorder %s1780_s26, 3 }
   0xd   : > { %s2263_s7 = scalar_select %p1873_p4, 1, 0 }
   0xe   : > { %s2264_s8 = scalar_select %p1878_p6, 1, 0 }
   0xf   : > { %p1883_p8 = pnand %p1316_p5, %p212_p7  ;;  %s1782_s10 = smov [#allocation9]  }
  0x10   : > { %2265 = sst [smem:[#allocation16_spill]] %s2264_s8  ;;  %s226_s11 = sshll.u32 %s1782_s10, 4  ;;  %s1887_s11 = int_to_ptr.vmem [resolvable:$true] %s226_s11 }
  0x11   : > { %p1447_p9 = pneg %p1883_p8  ;;  %s1783_s13 = smov [#allocation11]  }
  0x12   : > { %s248_s14 = sshll.u32 %s1783_s13, 4  ;;  %s1608_s17 = scalar_lea.hbm %s2250_s1, 1024  ;;  %s1898_s14 = int_to_ptr.vmem [resolvable:$true] %s248_s14 }
  0x13   : > { %p1894_p11 = pnand %p1447_p9, %p1863_p1  ;;  %p1609_p12 = scmp.ne.s32.totalorder %s2250_s1, %s1608_s17 }
  0x14   : > { %p1615_p5 = scmp.lt.u32.totalorder %s1608_s17, %s2250_s1 }
  0x15   : > { %p1610_p13 = pneg %p1894_p11 }
  0x17   : > { %p1611_p0 = pnand %p1610_p13, %p1609_p12 }
  0x19   : > { %p1612_p3 = pneg %p1611_p0 }
  0x1b   : > { %p1617_p7 = pnand %p1615_p5, %p1612_p3 }
  0x1d   : > { %1620 = shalt.err (!%p1617_p7)
}
  0x1e   : > { %s1621_s28 = scalar_lea.vmem %s1887_s11, 1024  ;;  %p1629_p1 = scmp.lt.s32.totalorder %s1887_s11, %s1887_s11 }
  0x1f   : > { %p1622_p9 = scmp.ne.s32.totalorder %s1887_s11, %s1621_s28  ;;  %p1630_p12 = scmp.lt.s32.totalorder %s1621_s28, %s1621_s28 }
  0x21   : > { %p1624_p10 = pnand %p1622_p9, %p1610_p13  ;;  %p1631_p0 = por %p1630_p12, %p1629_p1 }
  0x23   : > { %p1625_p6 = pneg %p1624_p10 }
  0x25   : > { %p1632_p4 = pnand %p1631_p0, %p1625_p6 }
  0x27   : > { %1635 = shalt.err (!%p1632_p4)
}
  0x28   : > { %s1784_s10 = smov 64   ;;  %s1785_s13 = smov 4  }
  0x29   : > { %1450 = dma.hbm_to_vmem [thread:$0]  (!%p1894_p11), %s2250_s1, 1024, %s1887_s11, [#allocation10], %s1784_s10, %s1784_s10, %s1785_s13  }
  0x2a   : > { %s1636_s19 = scalar_lea.hbm %s2252_s3, 1024 }
  0x2b   : > { %p1637_p1 = scmp.ne.s32.totalorder %s2252_s3, %s1636_s19  ;;  %p1643_p10 = scmp.lt.u32.totalorder %s1636_s19, %s2252_s3 }
  0x2d   : > { %p1639_p4 = pnand %p1637_p1, %p1610_p13 }
  0x2f   : > { %p1640_p6 = pneg %p1639_p4 }
  0x31   : > { %p1645_p3 = pnand %p1643_p10, %p1640_p6 }
  0x33   : > { %1648 = shalt.err (!%p1645_p3)
}
  0x34   : > { %s1649_s11 = scalar_lea.vmem %s1898_s14, 1024  ;;  %p1657_p12 = scmp.lt.s32.totalorder %s1898_s14, %s1898_s14 }
  0x35   : > { %p1650_p5 = scmp.ne.s32.totalorder %s1898_s14, %s1649_s11  ;;  %p1658_p0 = scmp.lt.s32.totalorder %s1649_s11, %s1649_s11 }
  0x37   : > { %p1652_p7 = pnand %p1650_p5, %p1610_p13  ;;  %p1659_p1 = por %p1658_p0, %p1657_p12 }
  0x39   : > { %p1653_p9 = pneg %p1652_p7 }
  0x3b   : > { %p1660_p4 = pnand %p1659_p1, %p1653_p9 }
  0x3d   : > { %1663 = shalt.err (!%p1660_p4)
}
  0x3e   : > { %1453 = dma.hbm_to_vmem [thread:$0]  (!%p1894_p11), %s2252_s3, 1024, %s1898_s14, [#allocation10], %s1784_s10, %s1784_s10, %s1785_s13  }
  0x3f   : > { %s35_s16 = sadd.s32 1, %s1776_s25  ;;  %s42_s17 = sadd.s32 1, %s1768_s23 }
  0x40   : > { %p37_p13 = scmp.ge.s32.totalorder %s35_s16, 2  ;;  %p49_p6 = scmp.ne.s32.totalorder %s1768_s23, %s1764_s22 }
  0x41   : > { %p50_p10 = scmp.eq.s32.totalorder %s1780_s26, 0  ;;  %p1464_p3 = scmp.lt.s32.totalorder %s1780_s26, 2 }
  0x42   : > { %s2282_s16 = smov (%p37_p13, %s35_s16), 0  ;;  %p1962_p7 = por %p1867_p2, %p49_p6 }
  0x43   : > { %p51_p5 = por %p50_p10, %p49_p6  ;;  %s39_s18 = ssub.s32 %s1776_s25, %s2282_s16 }
  0x44   : > { %s2268_s12 = scalar_select %p1962_p7, 1, 0 }
  0x45   : > { %s268_s19 = sand.u32 1, %s1768_s23   ;;  %p40_p9 = scmp.eq.s32.totalorder %s39_s18, 0 }
  0x46   : > { %s1321_s14 = sshll.u32 %s268_s19, 6  ;;  %s1361_s10 = sshll.u32 %s1776_s25, 10 }
  0x47   : > { %s1971_s13 = scalar_select %p40_p9, %s1768_s23, %s42_s17  }
  0x48   : > { %s1976_s28 = scalar_lea.hbm %s2249_s0, %s1361_s10  ;;  %s272_s30 = scalar_lea.vmem [#allocation6], %s1321_s14 }
  0x49   : > { %s279_s11 = sshll.u32 %s272_s30, 4  ;;  %p1980_p2 = pnand %p1464_p3, %p51_p5  ;;  %s1984_s11 = int_to_ptr.vmem [resolvable:$true] %s279_s11 }
  0x4a   : > { %s1986_s15 = scalar_lea.sflag [#allocation7], %s268_s19  ;;  %s1664_s17 = scalar_lea.hbm %s1976_s28, 1024 }
  0x4b   : > { %p1665_p11 = scmp.ne.s32.totalorder %s1976_s28, %s1664_s17  ;;  %p1666_p12 = pneg %p1980_p2 }
  0x4c   : > { %s1669_s10 = scalar_lea.hbm %s2249_s0, 2048  ;;  %p1670_p4 = scmp.lt.u32.totalorder %s1976_s28, %s2249_s0 }
  0x4d   : > { %p1667_p0 = pnand %p1666_p12, %p1665_p11  ;;  %p1671_p13 = scmp.lt.u32.totalorder %s1669_s10, %s1664_s17 }
  0x4e   : > { %p1673_p10 = scmp.lt.u32.totalorder %s1664_s17, %s1976_s28 }
  0x4f   : > { %p1668_p1 = pneg %p1667_p0  ;;  %p1672_p6 = por %p1671_p13, %p1670_p4 }
  0x51   : > { %p1674_p3 = por %p1673_p10, %p1672_p6 }
  0x53   : > { %p1675_p5 = pnand %p1674_p3, %p1668_p1 }
  0x55   : > { %1678 = shalt.err (!%p1675_p5)
}
  0x56   : > { %s1679_s19 = scalar_lea.vmem %s1984_s11, 1024  ;;  %s1786_s30 = smov [#allocation6]  }
  0x57   : > { %p1680_p9 = scmp.ne.s32.totalorder %s1984_s11, %s1679_s19  ;;  %s1684_s18 = sshll.u32 %s1786_s30, 4  ;;  %s1685_s18 = int_to_ptr.vmem [resolvable:$false] %s1684_s18 }
  0x58   : > { %s1686_s14 = scalar_lea.vmem %s1685_s18, 2048  ;;  %p1687_p7 = scmp.lt.s32.totalorder %s1984_s11, %s1685_s18 }
  0x59   : > { %p1682_p11 = pnand %p1680_p9, %p1666_p12  ;;  %p1688_p4 = scmp.lt.s32.totalorder %s1686_s14, %s1679_s19 }
  0x5b   : > { %p1683_p0 = pneg %p1682_p11  ;;  %p1689_p13 = por %p1688_p4, %p1687_p7 }
  0x5d   : > { %p1690_p6 = pnand %p1689_p13, %p1683_p0 }
  0x5f   : > { %1693 = shalt.err (!%p1690_p6)
}
  0x60   : > { %s1787_s17 = smov 128   ;;  %s1788_s10 = smov 8  }
  0x61   : > { %1457 = dma.hbm_to_vmem [thread:$0]  (!%p1980_p2), %s1976_s28, 1024, %s1984_s11, %s1986_s15, %s1787_s17, %s1787_s17, %s1788_s10  }
  0x62   : > { %291 = sbr.rel (%p1883_p8) target bundleno = 885 (0x375), region = 44  ;;  %s2017_s20 = sand.u32 (!%p1883_p8), 1, %s1764_s22  }
  0x63   : > { %s1325_s27 = sshll.u32 (!%p1883_p8), %s2017_s20, 6  ;;  %s294_s19 = scalar_lea.sflag (!%p1883_p8), [#allocation7], %s2017_s20 }
  0x64   : > { %s297_s30 = scalar_lea.vmem (!%p1883_p8), [#allocation6], %s1325_s27  ;;  %p2270_p7 = scmp.ne.s32.totalorder (!%p1883_p8), %s2263_s7, 0 }
  0x69   : > { %1747 = dma.done.wait (%p2270_p7), %s294_s19, 1024  }
  0x6a   : > { %1749 = vsyncadd (%p2270_p7), %s294_s19, 4294966272  ;;  %p2271_p2 = scmp.ne.s32.totalorder %s2261_s29, 0 }
  0x6c   : > { %1751 = dma.done.wait (%p2271_p2), [#allocation10], 2048  }
  0x6d   : > { %1753 = vsyncadd (%p2271_p2), [#allocation10], 4294965248  ;;  %v2031_v0 = vld [vmem:[%s297_s30 + $0x10] sm:$0xff]  ;;  %v2033_v1 = vld [vmem:[%s297_s30] sm:$0xff]  ;;  %vm476_vm0 = vcmask 7168   ;;  %s2183_s15 = scalar_lea.vmem [#allocation12], %s1325_s27 }
  0x6e   : > { %360 = vadd.xlane.f32.xlu1 %v2031_v0  ;;  %356 = vadd.xlane.f32.xlu0 %v2033_v1  ;;  %v2037_v2 = vld [vmem:[%s297_s30 + $0x18] sm:$0xff]  ;;  %v2039_v3 = vld [vmem:[%s297_s30 + $0x8] sm:$0xff]  ;;  %v372_v5 = vmul.f32 %v2033_v1, %v2033_v1  ;;  %v374_v7 = vmul.f32 %v2031_v0, %v2031_v0  ;;  %v2053_v9 = vld [vmem:[%s297_s30 + $0x20] sm:$0xff]  ;;  %s1198_s18 = sshll.u32 %s2183_s15, 4  ;;  %s1362_s14 = sshll.u32 %s1772_s24, 10  ;;  %s2192_s18 = int_to_ptr.vmem [resolvable:$true] %s1198_s18 }
  0x6f   : > { %v373_v4 = vmul.f32 %v2039_v3, %v2039_v3  ;;  %v375_v6 = vmul.f32 %v2037_v2, %v2037_v2  ;;  %v2051_v8 = vld [vmem:[%s297_s30 + $0x28] sm:$0xff]  ;;  %v1528_v10 = vld [vmem:[#allocation9] sm:$0xff]   ;;  %v2057_v11 = vld [vmem:[%s297_s30 + $0x38] sm:$0xff]  ;;  %v376_v15 = vmul.f32 %v2053_v9, %v2053_v9  ;;  %s2198_s27 = scalar_lea.hbm %s2255_s6, %s1362_s14  ;;  %s1185_s24 = scalar_lea.sflag [#allocation8], %s2017_s20 }
  0x70   : > { %1387 = vmatprep.subr.bf16.mxu0 %v1528_v10  ;;  %v2059_v12 = vld [vmem:[%s297_s30 + $0x30] sm:$0xff]  ;;  %v1529_v13 = vld [vmem:[#allocation9 + $0x8] sm:$0xff]   ;;  %v377_v14 = vmul.f32 %v2051_v8, %v2051_v8  ;;  %v379_v17 = vmul.f32 %v2057_v11, %v2057_v11  ;;  %v1531_v19 = vld [vmem:[#allocation9 + $0x18] sm:$0xff]   ;;  %s1694_s19 = scalar_lea.vmem %s2192_s18, 1024  ;;  %p2272_p12 = scmp.ne.s32.totalorder %s2268_s12, 0 }
  0x71   : > { %1388 = vmatpush3.bf16.msra.mxu0 %v1528_v10  ;;  %v1530_v16 = vld [vmem:[#allocation9 + $0x10] sm:$0xff]   ;;  %v378_v18 = vmul.f32 %v2059_v12, %v2059_v12  ;;  %v1532_v20 = vld [vmem:[#allocation9 + $0x20] sm:$0xff]   ;;  %v1533_v21 = vld [vmem:[#allocation9 + $0x28] sm:$0xff]   ;;  %p1695_p8 = scmp.ne.s32.totalorder %s2192_s18, %s1694_s19  ;;  %s1791_s30 = smov [#allocation12]  }
  0x72   : > { %362 = vadd.xlane.f32.xlu1 %v2037_v2  ;;  %358 = vadd.xlane.f32.xlu0 %v2039_v3  ;;  %v1534_v22 = vld [vmem:[#allocation9 + $0x30] sm:$0xff]   ;;  %v1535_v23 = vld [vmem:[#allocation9 + $0x38] sm:$0xff]   ;;  %s1698_s29 = sshll.u32 %s1791_s30, 4  ;;  %s1699_s29 = int_to_ptr.vmem [resolvable:$false] %s1698_s29 }
  0x73   : > { %1389 = vmatprep.subr.bf16.mxu0 %v1529_v13  ;;  %p1696_p1 = pnand %p1695_p8, %p2272_p12  ;;  %s1700_s7 = scalar_lea.vmem %s1699_s29, 2048 }
  0x74   : > { %p1701_p3 = scmp.lt.s32.totalorder %s2192_s18, %s1699_s29  ;;  %p1702_p5 = scmp.lt.s32.totalorder %s1700_s7, %s1694_s19 }
  0x75   : > { %1390 = vmatpush3.bf16.msra.mxu0 %v1529_v13  ;;  %p1697_p10 = pneg %p1696_p1 }
  0x76   : > { %382 = vadd.xlane.f32.xlu1 %v373_v4  ;;  %380 = vadd.xlane.f32.xlu0 %v372_v5  ;;  %p1703_p9 = por %p1702_p5, %p1701_p3 }
  0x77   : > { %1391 = vmatprep.subr.bf16.mxu0 %v1530_v16 }
  0x78   : > { %p1704_p11 = pnand %p1703_p9, %p1697_p10 }
  0x79   : > { %1392 = vmatpush3.bf16.msra.mxu0 %v1530_v16 }
  0x7a   : > { %386 = vadd.xlane.f32.xlu1 %v375_v6  ;;  %384 = vadd.xlane.f32.xlu0 %v374_v7 }
  0x7b   : > { %1393 = vmatprep.subr.bf16.mxu0 %v1531_v19 }
  0x7d   : > { %1394 = vmatpush3.bf16.msra.mxu0 %v1531_v19 }
  0x7e   : > { %366 = vadd.xlane.f32.xlu1 %v2051_v8  ;;  %364 = vadd.xlane.f32.xlu0 %v2053_v9 }
  0x7f   : > { %1395 = vmatprep.subr.bf16.mxu0 %v1532_v20 }
  0x81   : > { %1396 = vmatpush3.bf16.msra.mxu0 %v1532_v20 }
  0x82   : > { %370 = vadd.xlane.f32.xlu1 %v2057_v11  ;;  %368 = vadd.xlane.f32.xlu0 %v2059_v12 }
  0x83   : > { %1397 = vmatprep.subr.bf16.mxu0 %v1533_v21 }
  0x85   : > { %1398 = vmatpush3.bf16.msra.mxu0 %v1533_v21 }
  0x86   : > { %390 = vadd.xlane.f32.xlu1 %v377_v14  ;;  %388 = vadd.xlane.f32.xlu0 %v376_v15 }
  0x87   : > { %1399 = vmatprep.subr.bf16.mxu0 %v1534_v22 }
  0x89   : > { %1400 = vmatpush3.bf16.msra.mxu0 %v1534_v22 }
  0x8a   : > { %394 = vadd.xlane.f32.xlu1 %v379_v17  ;;  %392 = vadd.xlane.f32.xlu0 %v378_v18 }
  0x8b   : > { %1401 = vmatprep.subr.bf16.mxu0 %v1535_v23 }
  0x8d   : > { %1402 = vmatpush3.bf16.msra.mxu0 %v1535_v23 }
  0xfb   : > { %v361_v24 = vpop.xlane.xlu1 %360  ;;  %v357_v25 = vpop.xlane.xlu0 %356 }
  0xfc   : > { %v396_v28 = vmul.f32 0.03125, %v357_v25  ;;  %v2071_v30 = vmul.f32 0.03125, %v361_v24 }
  0xfe   : > { %v412_v34 = vmul.f32 %v396_v28, %v396_v28  ;;  %v414_v40 = vmul.f32 %v2071_v30, %v2071_v30  ;;  %v428_v58 = vsub.f32 %v2033_v1, %v396_v28  ;;  %v430_v18 = vsub.f32 %v2031_v0, %v2071_v30 }
  0xff   : > { %v363_v26 = vpop.xlane.xlu1 %362  ;;  %v359_v27 = vpop.xlane.xlu0 %358 }
 0x100   : > { %v397_v29 = vmul.f32 0.03125, %v359_v27  ;;  %v399_v31 = vmul.f32 0.03125, %v363_v26 }
 0x102   : > { %v413_v35 = vmul.f32 %v397_v29, %v397_v29  ;;  %v415_v41 = vmul.f32 %v399_v31, %v399_v31  ;;  %v429_v59 = vsub.f32 %v2039_v3, %v397_v29  ;;  %v431_v1 = vsub.f32 %v2037_v2, %v399_v31 }
 0x103   : > { %v383_v32 = vpop.xlane.xlu1 %382  ;;  %v381_v33 = vpop.xlane.xlu0 %380 }
 0x104   : > { %v405_v36 = vmul.f32 0.03125, %v383_v32  ;;  %v404_v37 = vmul.f32 0.03125, %v381_v33 }
 0x106   : > { %v421_v38 = vsub.f32 %v405_v36, %v413_v35  ;;  %v420_v39 = vsub.f32 %v404_v37, %v412_v34 }
 0x107   : > { %v387_v42 = vpop.xlane.xlu1 %386  ;;  %v385_v43 = vpop.xlane.xlu0 %384 }
 0x108   : > { %v437_v44 = vadd.f32 1e-05, %v421_v38  ;;  %v436_v45 = vadd.f32 1e-05, %v420_v39  ;;  %v407_v46 = vmul.f32 0.03125, %v387_v42  ;;  %v406_v47 = vmul.f32 0.03125, %v385_v43 }
 0x10a   : > { %1544 = vrsqrt.f32 %v437_v44  ;;  %v423_v48 = vsub.f32 %v407_v46, %v415_v41  ;;  %v422_v49 = vsub.f32 %v406_v47, %v414_v40 }
 0x10b   : > { %1546 = vrsqrt.f32 %v436_v45  ;;  %v367_v50 = vpop.xlane.xlu1 %366  ;;  %v365_v51 = vpop.xlane.xlu0 %364 }
 0x10c   : > { %v439_v52 = vadd.f32 1e-05, %v423_v48  ;;  %v438_v53 = vadd.f32 1e-05, %v422_v49  ;;  %v401_v56 = vmul.f32 0.03125, %v367_v50  ;;  %v400_v57 = vmul.f32 0.03125, %v365_v51 }
 0x10d   : > { %v1536_v48 = vld [vmem:[#allocation11] sm:$0xff]   ;;  %v1541_v49 = vld [vmem:[#allocation11 + $0x28] sm:$0xff]   ;;  %v1542_v50 = vld [vmem:[#allocation11 + $0x30] sm:$0xff]  }
 0x10e   : > { %1548 = vrsqrt.f32 %v439_v52  ;;  %v417_v5 = vmul.f32 %v401_v56, %v401_v56  ;;  %v416_v6 = vmul.f32 %v400_v57, %v400_v57  ;;  %v433_v31 = vsub.f32 %v2051_v8, %v401_v56  ;;  %1411 = vmatprep.subr.bf16.mxu1 %v1536_v48  ;;  %v1537_v8 = vld [vmem:[#allocation11 + $0x8] sm:$0xff]   ;;  %v1543_v51 = vld [vmem:[#allocation11 + $0x38] sm:$0xff]  }
 0x10f   : > { %1550 = vrsqrt.f32 %v438_v53  ;;  %v371_v54 = vpop.xlane.xlu1 %370  ;;  %v369_v55 = vpop.xlane.xlu0 %368  ;;  %v432_v36 = vsub.f32 %v2053_v9, %v400_v57  ;;  %1412 = vmatpush3.bf16.msra.mxu1 %v1536_v48  ;;  %v1538_v9 = vld [vmem:[#allocation11 + $0x10] sm:$0xff]   ;;  %v1789_v52 = vmov 0.0   ;;  %v1329_v53 = vld [vmem:[%s2251_s2] ss:$0 sm:$0xff] }
 0x110   : > { %v403_v60 = vmul.f32 0.03125, %v371_v54  ;;  %v402_v61 = vmul.f32 0.03125, %v369_v55  ;;  %1413 = vmatprep.subr.bf16.mxu1 %v1537_v8  ;;  %479 = vst.msk [vmem:[#allocation4 + $0x10] sm:$0xff] %vm476_vm0, %v1789_v52  ;;  %477 = vst.msk [vmem:[#allocation4] sm:$0xff] %vm476_vm0, %v1789_v52 }
 0x111   : > { %478 = vst.msk [vmem:[#allocation4 + $0x8] sm:$0xff] %vm476_vm0, %v1789_v52  ;;  %480 = vst.msk [vmem:[#allocation4 + $0x18] sm:$0xff] %vm476_vm0, %v1789_v52 }
 0x112   : > { %v419_v3 = vmul.f32 %v403_v60, %v403_v60  ;;  %v418_v19 = vmul.f32 %v402_v61, %v402_v61  ;;  %v435_v40 = vsub.f32 %v2057_v11, %v403_v60  ;;  %v434_v42 = vsub.f32 %v2059_v12, %v402_v61  ;;  %v1539_v11 = vld [vmem:[#allocation11 + $0x18] sm:$0xff]   ;;  %v1540_v12 = vld [vmem:[#allocation11 + $0x20] sm:$0xff]   ;;  %481 = vst.msk [vmem:[#allocation4 + $0x20] sm:$0xff] %vm476_vm0, %v1789_v52 }
 0x113   : > { %v391_v62 = vpop.xlane.xlu1 %390  ;;  %v389_v63 = vpop.xlane.xlu0 %388  ;;  %1414 = vmatpush3.bf16.msra.mxu1 %v1537_v8  ;;  %482 = vst.msk [vmem:[#allocation4 + $0x28] sm:$0xff] %vm476_vm0, %v1789_v52  ;;  %483 = vst.msk [vmem:[#allocation4 + $0x30] sm:$0xff] %vm476_vm0, %v1789_v52 }
 0x114   : > { %v1545_v4 = vpop.eup %1544  ;;  %v409_v7 = vmul.f32 0.03125, %v391_v62  ;;  %v408_v10 = vmul.f32 0.03125, %v389_v63  ;;  %1415 = vmatprep.subr.bf16.mxu1 %v1538_v9  ;;  %484 = vst.msk [vmem:[#allocation4 + $0x38] sm:$0xff] %vm476_vm0, %v1789_v52  ;;  %485 = vst.msk [vmem:[#allocation5] sm:$0xff] %vm476_vm0, %v1789_v52 }
 0x115   : > { %v1547_v13 = vpop.eup %1546  ;;  %v453_v14 = vmul.f32 %v1545_v4, %v429_v59  ;;  %486 = vst.msk [vmem:[#allocation5 + $0x8] sm:$0xff] %vm476_vm0, %v1789_v52  ;;  %487 = vst.msk [vmem:[#allocation5 + $0x10] sm:$0xff] %vm476_vm0, %v1789_v52 }
 0x116   : > { %v425_v15 = vsub.f32 %v409_v7, %v417_v5  ;;  %v424_v16 = vsub.f32 %v408_v10, %v416_v6  ;;  %v452_v17 = vmul.f32 %v1547_v13, %v428_v58  ;;  %488 = vst.msk [vmem:[#allocation5 + $0x18] sm:$0xff] %vm476_vm0, %v1789_v52  ;;  %489 = vst.msk [vmem:[#allocation5 + $0x20] sm:$0xff] %vm476_vm0, %v1789_v52 }
 0x117   : > { %v395_v20 = vpop.xlane.xlu1 %394  ;;  %v393_v21 = vpop.xlane.xlu0 %392  ;;  %1416 = vmatpush3.bf16.msra.mxu1 %v1538_v9  ;;  %490 = vst.msk [vmem:[#allocation5 + $0x28] sm:$0xff] %vm476_vm0, %v1789_v52  ;;  %491 = vst.msk [vmem:[#allocation5 + $0x30] sm:$0xff] %vm476_vm0, %v1789_v52 }
 0x118   : > { %v1549_v22 = vpop.eup %1548  ;;  %v441_v23 = vadd.f32 1e-05, %v425_v15  ;;  %v440_v24 = vadd.f32 1e-05, %v424_v16  ;;  %v411_v25 = vmul.f32 0.03125, %v395_v20  ;;  %v410_v26 = vmul.f32 0.03125, %v393_v21  ;;  %1417 = vmatprep.subr.bf16.mxu1 %v1539_v11 }
 0x119   : > { %v1551_v27 = vpop.eup %1550  ;;  %v460_v28 = vpack.c.bf16 %v453_v14, %v452_v17  ;;  %v455_v29 = vmul.f32 %v1549_v22, %v431_v1  ;;  %492 = vst.msk [vmem:[#allocation5 + $0x38] sm:$0xff] %vm476_vm0, %v1789_v52 }
 0x11a   : > { %1552 = vrsqrt.f32 %v441_v23  ;;  %v427_v32 = vsub.f32 %v411_v25, %v419_v3  ;;  %v426_v33 = vsub.f32 %v410_v26, %v418_v19  ;;  %v454_v34 = vmul.f32 %v1551_v27, %v430_v18 }
 0x11b   : > { %1554 = vrsqrt.f32 %v440_v24  ;;  %1403 = vmatprep.mubr.bf16.mxu0 %v460_v28  ;;  %1418 = vmatpush3.bf16.msra.mxu1 %v1539_v11 }
 0x11c   : > { %v443_v0 = vadd.f32 1e-05, %v427_v32  ;;  %v442_v2 = vadd.f32 1e-05, %v426_v33  ;;  %v461_v30 = vpack.c.bf16 %v455_v29, %v454_v34  ;;  %1419 = vmatprep.subr.bf16.mxu1 %v1540_v12 }
 0x11e   : > { %1556 = vrsqrt.f32 %v443_v0  ;;  %1404 = vmatmul.mubr.bf16.vlgmr.msra.gmra.mrb[0].mxu0 %v461_v30 }
 0x11f   : > { %1558 = vrsqrt.f32 %v442_v2  ;;  %1420 = vmatpush3.bf16.msra.mxu1 %v1540_v12 }
 0x120   : > { %1421 = vmatprep.subr.bf16.mxu1 %v1541_v49 }
 0x123   : > { %1422 = vmatpush3.bf16.msra.mxu1 %v1541_v49 }
 0x124   : > { %v1553_v35 = vpop.eup %1552  ;;  %1423 = vmatprep.subr.bf16.mxu1 %v1542_v50 }
 0x125   : > { %v1555_v37 = vpop.eup %1554  ;;  %v457_v38 = vmul.f32 %v1553_v35, %v433_v31 }
 0x126   : > { %v456_v39 = vmul.f32 %v1555_v37, %v432_v36 }
 0x127   : > { %1424 = vmatpush3.bf16.msra.mxu1 %v1542_v50 }
 0x128   : > { %v1557_v41 = vpop.eup %1556  ;;  %v462_v43 = vpack.c.bf16 %v457_v38, %v456_v39  ;;  %1425 = vmatprep.subr.bf16.mxu1 %v1543_v51 }
 0x129   : > { %v1559_v44 = vpop.eup %1558  ;;  %v459_v45 = vmul.f32 %v1557_v41, %v435_v40 }
 0x12a   : > { %1407 = vmatprep.mubr.bf16.mxu0 %v462_v43  ;;  %v458_v46 = vmul.f32 %v1559_v44, %v434_v42 }
 0x12b   : > { %1426 = vmatpush3.bf16.msra.mxu1 %v1543_v51 }
 0x12c   : > { %v463_v47 = vpack.c.bf16 %v459_v45, %v458_v46 }
 0x12e   : > { %1408 = vmatmul.mubr.bf16.gmra.mrb[4].mxu0 %v463_v47 }
 0x1f1   : > { %v1405_v54 = vpop.f32.mrb[0].mxu0 }
 0x1f2   : > { %v2103_v55 = vadd.f32 %v1405_v54, %v1329_v53  ;;  %v602_v56 = vpop.f32.mrb[1].mxu0 }
 0x1f3   : > { %v2105_v57 = vadd.f32 %v1329_v53, %v602_v56  ;;  %v1406_v58 = vpop.f32.mrb[2].mxu0 }
 0x1f4   : > { %v635_v59 = vmul.f32 %v2103_v55, %v2103_v55  ;;  %v2109_v60 = vadd.f32 %v1406_v58, %v1329_v53  ;;  %v605_v61 = vpop.f32.mrb[3].mxu0 }
 0x1f5   : > { %v633_v62 = vmul.f32 %v2105_v57, %v2105_v57  ;;  %v2113_v63 = vadd.f32 %v1329_v53, %v605_v61 }
 0x1f6   : > { %v643_v4 = vmul.f32 %v635_v59, %v2103_v55  ;;  %v636_v5 = vmul.f32 %v2109_v60, %v2109_v60 }
 0x1f7   : > { %v641_v6 = vmul.f32 %v633_v62, %v2105_v57  ;;  %v634_v7 = vmul.f32 %v2113_v63, %v2113_v63 }
 0x1f8   : > { %v651_v10 = vmul.f32 0.044715, %v643_v4  ;;  %v644_v13 = vmul.f32 %v636_v5, %v2109_v60 }
 0x1f9   : > { %v649_v14 = vmul.f32 0.044715, %v641_v6  ;;  %v642_v15 = vmul.f32 %v634_v7, %v2113_v63 }
 0x1fa   : > { %v659_v16 = vadd.f32 %v651_v10, %v2103_v55  ;;  %v652_v17 = vmul.f32 0.044715, %v644_v13 }
 0x1fb   : > { %v657_v18 = vadd.f32 %v649_v14, %v2105_v57  ;;  %v650_v1 = vmul.f32 0.044715, %v642_v15 }
 0x1fc   : > { %v1340_v3 = vmul.f32 -1.5957692, %v659_v16  ;;  %v660_v19 = vadd.f32 %v652_v17, %v2109_v60 }
 0x1fd   : > { %v1338_v20 = vmul.f32 -1.5957692, %v657_v18  ;;  %v658_v21 = vadd.f32 %v650_v1, %v2113_v63 }
 0x1fe   : > { %v685_v22 = vmul.f32 1.442695, %v1340_v3  ;;  %v1341_v23 = vmul.f32 -1.5957692, %v660_v19 }
 0x1ff   : > { %v681_v24 = vmul.f32 1.442695, %v1338_v20  ;;  %v1339_v25 = vmul.f32 -1.5957692, %v658_v21 }
 0x200   : > { %1560 = vpow2.f32 %v685_v22  ;;  %v687_v26 = vmul.f32 1.442695, %v1341_v23 }
 0x201   : > { %1562 = vpow2.f32 %v681_v24  ;;  %v683_v27 = vmul.f32 1.442695, %v1339_v25  ;;  %v1409_v28 = vpop.f32.mrb[4].mxu0 }
 0x202   : > { %1564 = vpow2.f32 %v687_v26  ;;  %v2127_v29 = vadd.f32 %v1409_v28, %v1329_v53  ;;  %v618_v32 = vpop.f32.mrb[5].mxu0 }
 0x203   : > { %1566 = vpow2.f32 %v683_v27  ;;  %v2129_v33 = vadd.f32 %v1329_v53, %v618_v32  ;;  %v1410_v34 = vpop.f32.mrb[6].mxu0 }
 0x204   : > { %v639_v0 = vmul.f32 %v2127_v29, %v2127_v29  ;;  %v2133_v2 = vadd.f32 %v1410_v34, %v1329_v53  ;;  %v621_v30 = vpop.f32.mrb[7].mxu0 }
 0x205   : > { %v637_v31 = vmul.f32 %v2129_v33, %v2129_v33  ;;  %v2137_v35 = vadd.f32 %v1329_v53, %v621_v30 }
 0x206   : > { %v647_v36 = vmul.f32 %v639_v0, %v2127_v29  ;;  %v640_v37 = vmul.f32 %v2133_v2, %v2133_v2 }
 0x207   : > { %v645_v38 = vmul.f32 %v637_v31, %v2129_v33  ;;  %v638_v39 = vmul.f32 %v2137_v35, %v2137_v35 }
 0x208   : > { %v655_v40 = vmul.f32 0.044715, %v647_v36  ;;  %v648_v41 = vmul.f32 %v640_v37, %v2133_v2 }
 0x209   : > { %v653_v42 = vmul.f32 0.044715, %v645_v38  ;;  %v646_v43 = vmul.f32 %v638_v39, %v2137_v35 }
 0x20a   : > { %v1561_v44 = vpop.eup %1560  ;;  %v663_v45 = vadd.f32 %v655_v40, %v2127_v29  ;;  %v656_v46 = vmul.f32 0.044715, %v648_v41  ;;  %v732_v41 = vld [vmem:[#allocation4 + $0x18] sm:$0xff] }
 0x20b   : > { %v1563_v47 = vpop.eup %1562  ;;  %v699_v48 = vadd.f32 1.0, %v1561_v44  ;;  %v661_v8 = vadd.f32 %v653_v42, %v2129_v33  ;;  %v654_v9 = vmul.f32 0.044715, %v646_v43  ;;  %v729_v44 = vld [vmem:[#allocation4] sm:$0xff] }
 0x20c   : > { %v1565_v11 = vpop.eup %1564  ;;  %v697_v12 = vadd.f32 1.0, %v1563_v47  ;;  %v1344_v49 = vmul.f32 -1.5957692, %v663_v45  ;;  %v664_v50 = vadd.f32 %v656_v46, %v2133_v2  ;;  %v730_v47 = vld [vmem:[#allocation4 + $0x8] sm:$0xff] }
 0x20d   : > { %v1567_v51 = vpop.eup %1566  ;;  %1568 = vrcp.f32 %v699_v48  ;;  %v700_v52 = vadd.f32 1.0, %v1565_v11  ;;  %v1342_v53 = vmul.f32 -1.5957692, %v661_v8  ;;  %v662_v54 = vadd.f32 %v654_v9, %v2137_v35  ;;  %v772_v9 = vld [vmem:[#allocation5 + $0x10] sm:$0xff] }
 0x20e   : > { %1570 = vrcp.f32 %v697_v12  ;;  %v698_v56 = vadd.f32 1.0, %v1567_v51  ;;  %v693_v58 = vmul.f32 1.442695, %v1344_v49  ;;  %v1345_v59 = vmul.f32 -1.5957692, %v664_v50  ;;  %v773_v49 = vld [vmem:[#allocation5 + $0x18] sm:$0xff] }
 0x20f   : > { %1572 = vrcp.f32 %v700_v52  ;;  %v689_v61 = vmul.f32 1.442695, %v1342_v53  ;;  %v1343_v62 = vmul.f32 -1.5957692, %v662_v54  ;;  %v770_v52 = vld [vmem:[#allocation5] sm:$0xff] }
 0x210   : > { %1574 = vrcp.f32 %v698_v56  ;;  %v695_v4 = vmul.f32 1.442695, %v1345_v59  ;;  %v771_v59 = vld [vmem:[#allocation5 + $0x8] sm:$0xff] }
 0x211   : > { %1576 = vpow2.f32 %v693_v58  ;;  %v691_v5 = vmul.f32 1.442695, %v1343_v62 }
 0x212   : > { %1578 = vpow2.f32 %v689_v61 }
 0x213   : > { %1580 = vpow2.f32 %v695_v4 }
 0x214   : > { %1582 = vpow2.f32 %v691_v5 }
 0x217   : > { %v1569_v6 = vpop.eup %1568 }
 0x218   : > { %v1571_v7 = vpop.eup %1570  ;;  %v723_v10 = vmul.f32 %v1569_v6, %v2103_v55 }
 0x219   : > { %v1573_v13 = vpop.eup %1572  ;;  %v721_v17 = vmul.f32 %v1571_v7, %v2105_v57  ;;  %v735_v7 = vld [vmem:[#allocation4 + $0x30] sm:$0xff] }
 0x21a   : > { %v1575_v14 = vpop.eup %1574  ;;  %741 = vadd.xlane.f32.xlu0 %v723_v10  ;;  %v724_v15 = vmul.f32 %v1573_v13, %v2109_v60  ;;  %v780_v57 = vmul.f32 %v723_v10, %v723_v10 }
 0x21b   : > { %v1577_v16 = vpop.eup %1576  ;;  %v722_v18 = vmul.f32 %v1575_v14, %v2113_v63  ;;  %v778_v63 = vmul.f32 %v721_v17, %v721_v17 }
 0x21c   : > { %v1579_v1 = vpop.eup %1578  ;;  %v703_v3 = vadd.f32 1.0, %v1577_v16  ;;  %743 = vadd.xlane.f32.xlu1 %v724_v15  ;;  %v827_v19 = vpack.c.bf16 %v724_v15, %v723_v10  ;;  %v781_v60 = vmul.f32 %v724_v15, %v724_v15  ;;  %v736_v16 = vld [vmem:[#allocation4 + $0x38] sm:$0xff] }
 0x21d   : > { %v1581_v20 = vpop.eup %1580  ;;  %v701_v21 = vadd.f32 1.0, %v1579_v1  ;;  %v826_v22 = vpack.c.bf16 %v722_v18, %v721_v17  ;;  %v779_v25 = vmul.f32 %v722_v18, %v722_v18  ;;  %v733_v1 = vld [vmem:[#allocation4 + $0x20] sm:$0xff] }
 0x21e   : > { %v1583_v23 = vpop.eup %1582  ;;  %1584 = vrcp.f32 %v703_v3  ;;  %v704_v55 = vadd.f32 1.0, %v1581_v20  ;;  %737 = vadd.xlane.f32.xlu0 %v721_v17 }
 0x21f   : > { %1586 = vrcp.f32 %v701_v21  ;;  %v702_v24 = vadd.f32 1.0, %v1583_v23  ;;  %1427 = vmatprep.mubr.bf16.mxu1 %v826_v22 }
 0x220   : > { %1588 = vrcp.f32 %v704_v55  ;;  %739 = vadd.xlane.f32.xlu1 %v722_v18  ;;  %1428 = vmatmul.mubr.bf16.vlgmr.msra.gmra.mrb[0].mxu1 %v827_v19 }
 0x221   : > { %1590 = vrcp.f32 %v702_v24  ;;  %v734_v24 = vld [vmem:[#allocation4 + $0x28] sm:$0xff] }
 0x222   : > { %790 = vadd.xlane.f32.xlu0 %v780_v57 }
 0x224   : > { %792 = vadd.xlane.f32.xlu1 %v781_v60 }
 0x226   : > { %786 = vadd.xlane.f32.xlu0 %v778_v63 }
 0x228   : > { %v1585_v26 = vpop.eup %1584  ;;  %788 = vadd.xlane.f32.xlu1 %v779_v25 }
 0x229   : > { %v1587_v27 = vpop.eup %1586  ;;  %v727_v28 = vmul.f32 %v1585_v26, %v2127_v29  ;;  %v1790_v29 = vmov 0   ;;  %v774_v26 = vld [vmem:[#allocation5 + $0x20] sm:$0xff] }
 0x22a   : > { %v1589_v32 = vpop.eup %1588  ;;  %v725_v30 = vmul.f32 %v1587_v27, %v2129_v33  ;;  %1526 = vset.pattern.permute.xlu1 %v1790_v29  ;;  %1527 = vset.pattern.permute.xlu0 %v1790_v29  ;;  %v731_v33 = vld [vmem:[#allocation4 + $0x10] sm:$0xff] }
 0x22b   : > { %v1591_v34 = vpop.eup %1590  ;;  %749 = vadd.xlane.f32.xlu0 %v727_v28  ;;  %v728_v0 = vmul.f32 %v1589_v32, %v2133_v2  ;;  %v784_v40 = vmul.f32 %v727_v28, %v727_v28 }
 0x22c   : > { %v726_v31 = vmul.f32 %v1591_v34, %v2137_v35  ;;  %v782_v38 = vmul.f32 %v725_v30, %v725_v30 }
 0x22d   : > { %751 = vadd.xlane.f32.xlu1 %v728_v0  ;;  %v829_v36 = vpack.c.bf16 %v728_v0, %v727_v28  ;;  %v785_v2 = vmul.f32 %v728_v0, %v728_v0 }
 0x22e   : > { %v828_v37 = vpack.c.bf16 %v726_v31, %v725_v30  ;;  %v783_v39 = vmul.f32 %v726_v31, %v726_v31 }
 0x22f   : > { %745 = vadd.xlane.f32.xlu0 %v725_v30 }
 0x230   : > { %1431 = vmatprep.mubr.bf16.mxu1 %v828_v37  ;;  %v775_v37 = vld [vmem:[#allocation5 + $0x28] sm:$0xff] }
 0x231   : > { %747 = vadd.xlane.f32.xlu1 %v726_v31  ;;  %1432 = vmatmul.mubr.bf16.gmra.mrb[4].mxu1 %v829_v36 }
 0x233   : > { %794 = vadd.xlane.f32.xlu0 %v782_v38 }
 0x235   : > { %796 = vadd.xlane.f32.xlu1 %v783_v39 }
 0x237   : > { %798 = vadd.xlane.f32.xlu0 %v784_v40 }
 0x239   : > { %800 = vadd.xlane.f32.xlu1 %v785_v2 }
 0x2a7   : > { %v742_v35 = vpop.xlane.xlu0 %741 }
 0x2a8   : > { %v755_v42 = vadd.f32 %v742_v35, %v731_v33  ;;  %v776_v33 = vld [vmem:[#allocation5 + $0x30] sm:$0xff] }
 0x2a9   : > { %v744_v43 = vpop.xlane.xlu1 %743 }
 0x2aa   : > { %764 = vst.msk [vmem:[#allocation4 + $0x10] sm:$0xff] %vm476_vm0, %v755_v42  ;;  %v756_v45 = vadd.f32 %v744_v43, %v732_v41 }
 0x2ab   : > { %v738_v46 = vpop.xlane.xlu0 %737 }
 0x2ac   : > { %765 = vst.msk [vmem:[#allocation4 + $0x18] sm:$0xff] %vm476_vm0, %v756_v45  ;;  %v753_v48 = vadd.f32 %v738_v46, %v729_v44  ;;  %v777_v46 = vld [vmem:[#allocation5 + $0x38] sm:$0xff] }
 0x2ad   : > { %v740_v8 = vpop.xlane.xlu1 %739 }
 0x2ae   : > { %762 = vst.msk [vmem:[#allocation4] sm:$0xff] %vm476_vm0, %v753_v48  ;;  %v754_v11 = vadd.f32 %v740_v8, %v730_v47 }
 0x2af   : > { %v791_v12 = vpop.xlane.xlu0 %790 }
 0x2b0   : > { %763 = vst.msk [vmem:[#allocation4 + $0x8] sm:$0xff] %vm476_vm0, %v754_v11  ;;  %v804_v50 = vadd.f32 %v791_v12, %v772_v9 }
 0x2b1   : > { %v793_v51 = vpop.xlane.xlu1 %792  ;;  %v980_v53 = vld [vmem:[#allocation4 + $0x10] sm:$0xff] }
 0x2b2   : > { %812 = vst.msk [vmem:[#allocation5 + $0x10] sm:$0xff] %vm476_vm0, %v804_v50  ;;  %v805_v54 = vadd.f32 %v793_v51, %v773_v49  ;;  %v988_v56 = vmul.f32 0.0078125, %v980_v53 }
 0x2b3   : > { %v787_v58 = vpop.xlane.xlu0 %786  ;;  %v981_v61 = vld [vmem:[#allocation4 + $0x18] sm:$0xff] }
 0x2b4   : > { %813 = vst.msk [vmem:[#allocation5 + $0x18] sm:$0xff] %vm476_vm0, %v805_v54  ;;  %v802_v62 = vadd.f32 %v787_v58, %v770_v52  ;;  %1063 = vperm.xlu1 %1526, %v988_v56   ;;  %v989_v10 = vmul.f32 0.0078125, %v981_v61  ;;  %v1012_v34 = vmul.f32 %v988_v56, %v988_v56 }
 0x2b5   : > { %v789_v4 = vpop.xlane.xlu1 %788  ;;  %v978_v5 = vld [vmem:[#allocation4] sm:$0xff] }
 0x2b6   : > { %810 = vst.msk [vmem:[#allocation5] sm:$0xff] %vm476_vm0, %v802_v62  ;;  %v803_v6 = vadd.f32 %v789_v4, %v771_v59  ;;  %v986_v13 = vmul.f32 0.0078125, %v978_v5  ;;  %v1013_v23 = vmul.f32 %v989_v10, %v989_v10 }
 0x2b7   : > { %v979_v14 = vld [vmem:[#allocation4 + $0x8] sm:$0xff] }
 0x2b8   : > { %811 = vst.msk [vmem:[#allocation5 + $0x8] sm:$0xff] %vm476_vm0, %v803_v6  ;;  %v750_v15 = vpop.xlane.xlu0 %749  ;;  %1068 = vperm.xlu1 %1526, %v989_v10   ;;  %1053 = vperm.xlu0 %1527, %v986_v13   ;;  %v987_v3 = vmul.f32 0.0078125, %v979_v14  ;;  %v1010_v43 = vmul.f32 %v986_v13, %v986_v13 }
 0x2b9   : > { %v759_v17 = vadd.f32 %v750_v15, %v735_v7  ;;  %v996_v19 = vld [vmem:[#allocation5 + $0x10] sm:$0xff] }
 0x2ba   : > { %v752_v18 = vpop.xlane.xlu1 %751  ;;  %v1004_v60 = vmul.f32 0.0078125, %v996_v19  ;;  %v1011_v31 = vmul.f32 %v987_v3, %v987_v3 }
 0x2bb   : > { %768 = vst.msk [vmem:[#allocation4 + $0x30] sm:$0xff] %vm476_vm0, %v759_v17  ;;  %v997_v20 = vld [vmem:[#allocation5 + $0x18] sm:$0xff]  ;;  %v760_v21 = vadd.f32 %v752_v18, %v736_v16 }
 0x2bc   : > { %v1005_v22 = vmul.f32 0.0078125, %v997_v20  ;;  %v746_v55 = vpop.xlane.xlu0 %745  ;;  %1058 = vperm.xlu1 %1526, %v987_v3   ;;  %v1020_v39 = vsub.f32 %v1004_v60, %v1012_v34 }
 0x2bd   : > { %769 = vst.msk [vmem:[#allocation4 + $0x38] sm:$0xff] %vm476_vm0, %v760_v21  ;;  %v757_v57 = vadd.f32 %v746_v55, %v733_v1  ;;  %v994_v27 = vld [vmem:[#allocation5] sm:$0xff] }
 0x2be   : > { %v1021_v63 = vsub.f32 %v1005_v22, %v1013_v23  ;;  %v748_v25 = vpop.xlane.xlu1 %747  ;;  %v1002_v29 = vmul.f32 0.0078125, %v994_v27  ;;  %v1028_v48 = vadd.f32 1e-05, %v1020_v39  ;;  %v1354_v39 = vld [vmem:[%s2253_s4] ss:$0 sm:$0xff] }
 0x2bf   : > { %766 = vst.msk [vmem:[#allocation4 + $0x20] sm:$0xff] %vm476_vm0, %v757_v57  ;;  %v995_v28 = vld [vmem:[#allocation5 + $0x8] sm:$0xff]  ;;  %v758_v32 = vadd.f32 %v748_v25, %v734_v24 }
 0x2c0   : > { %v1029_v0 = vadd.f32 1e-05, %v1021_v63  ;;  %v1003_v30 = vmul.f32 0.0078125, %v995_v28  ;;  %v795_v36 = vpop.xlane.xlu0 %794  ;;  %v1018_v8 = vsub.f32 %v1002_v29, %v1010_v43 }
 0x2c1   : > { %767 = vst.msk [vmem:[#allocation4 + $0x28] sm:$0xff] %vm476_vm0, %v758_v32  ;;  %v806_v38 = vadd.f32 %v795_v36, %v774_v26 }
 0x2c2   : > { %1592 = vrsqrt.f32 %v1029_v0  ;;  %v1019_v40 = vsub.f32 %v1003_v30, %v1011_v31  ;;  %v797_v2 = vpop.xlane.xlu1 %796  ;;  %v984_v35 = vld [vmem:[#allocation4 + $0x30] sm:$0xff]  ;;  %v1026_v53 = vadd.f32 1e-05, %v1018_v8 }
 0x2c3   : > { %814 = vst.msk [vmem:[#allocation5 + $0x20] sm:$0xff] %vm476_vm0, %v806_v38  ;;  %v807_v41 = vadd.f32 %v797_v2, %v775_v37  ;;  %v992_v42 = vmul.f32 0.0078125, %v984_v35 }
 0x2c4   : > { %v1027_v44 = vadd.f32 1e-05, %v1019_v40  ;;  %v799_v45 = vpop.xlane.xlu0 %798  ;;  %v985_v50 = vld [vmem:[#allocation4 + $0x38] sm:$0xff] }
 0x2c5   : > { %815 = vst.msk [vmem:[#allocation5 + $0x28] sm:$0xff] %vm476_vm0, %v807_v41  ;;  %v808_v47 = vadd.f32 %v799_v45, %v776_v33  ;;  %1083 = vperm.xlu1 %1526, %v992_v42   ;;  %v993_v59 = vmul.f32 0.0078125, %v985_v50  ;;  %v1016_v13 = vmul.f32 %v992_v42, %v992_v42  ;;  %v1355_v42 = vld [vmem:[%s2254_s5] ss:$0 sm:$0xff] }
 0x2c6   : > { %1594 = vrsqrt.f32 %v1027_v44  ;;  %v801_v9 = vpop.xlane.xlu1 %800  ;;  %v982_v11 = vld [vmem:[#allocation4 + $0x20] sm:$0xff] }
 0x2c7   : > { %816 = vst.msk [vmem:[#allocation5 + $0x30] sm:$0xff] %vm476_vm0, %v808_v47  ;;  %v809_v12 = vadd.f32 %v801_v9, %v777_v46  ;;  %v990_v49 = vmul.f32 0.0078125, %v982_v11  ;;  %1596 = vrsqrt.f32 %v1028_v48  ;;  %v1017_v18 = vmul.f32 %v993_v59, %v993_v59 }
 0x2c8   : > { %v983_v51 = vld [vmem:[#allocation4 + $0x28] sm:$0xff]  ;;  %1598 = vrsqrt.f32 %v1026_v53 }
 0x2c9   : > { %817 = vst.msk [vmem:[#allocation5 + $0x38] sm:$0xff] %vm476_vm0, %v809_v12  ;;  %1073 = vperm.xlu1 %1526, %v990_v49   ;;  %v991_v52 = vmul.f32 0.0078125, %v983_v51  ;;  %v1014_v58 = vmul.f32 %v990_v49, %v990_v49 }
 0x2ca   : > { %v998_v54 = vld [vmem:[#allocation5 + $0x20] sm:$0xff] }
 0x2cb   : > { %v1006_v56 = vmul.f32 0.0078125, %v998_v54  ;;  %v1015_v6 = vmul.f32 %v991_v52, %v991_v52 }
 0x2cc   : > { %v1593_v61 = vpop.eup %1592  ;;  %v999_v62 = vld [vmem:[#allocation5 + $0x28] sm:$0xff] }
 0x2cd   : > { %v1022_v4 = vsub.f32 %v1006_v56, %v1014_v58  ;;  %1088 = vperm.xlu1 %1526, %v993_v59   ;;  %1130 = vperm.xlu0 %1527, %v1593_v61   ;;  %v1007_v5 = vmul.f32 0.0078125, %v999_v62 }
 0x2ce   : > { %v1000_v7 = vld [vmem:[#allocation5 + $0x30] sm:$0xff] }
 0x2cf   : > { %v1008_v10 = vmul.f32 0.0078125, %v1000_v7  ;;  %v1030_v14 = vadd.f32 1e-05, %v1022_v4  ;;  %v1023_v15 = vsub.f32 %v1007_v5, %v1015_v6 }
 0x2d0   : > { %v1595_v16 = vpop.eup %1594  ;;  %v1001_v17 = vld [vmem:[#allocation5 + $0x38] sm:$0xff] }
 0x2d1   : > { %v1024_v1 = vsub.f32 %v1008_v10, %v1016_v13  ;;  %1600 = vrsqrt.f32 %v1030_v14  ;;  %v1009_v3 = vmul.f32 0.0078125, %v1001_v17  ;;  %v1031_v19 = vadd.f32 1e-05, %v1023_v15  ;;  %1078 = vperm.xlu1 %1526, %v991_v52   ;;  %1120 = vperm.xlu0 %1527, %v1595_v16   ;;  %v1597_v22 = vpop.eup %1596 }
 0x2d2   : > { %v1599_v55 = vpop.eup %1598 }
 0x2d3   : > { %v1032_v20 = vadd.f32 1e-05, %v1024_v1  ;;  %v1025_v21 = vsub.f32 %v1009_v3, %v1017_v18  ;;  %1602 = vrsqrt.f32 %v1031_v19 }
 0x2d5   : > { %1604 = vrsqrt.f32 %v1032_v20  ;;  %v1033_v23 = vadd.f32 1e-05, %v1025_v21  ;;  %1125 = vperm.xlu1 %1526, %v1597_v22  }
 0x2d7   : > { %1606 = vrsqrt.f32 %v1033_v23 }
 0x2d9   : > { %1115 = vperm.xlu1 %1526, %v1599_v55  }
 0x2db   : > { %v1601_v24 = vpop.eup %1600 }
 0x2dd   : > { %v1603_v57 = vpop.eup %1602  ;;  %1135 = vperm.xlu1 %1526, %v1601_v24  }
 0x2de   : > { %1140 = vperm.xlu0 %1527, %v1603_v57  }
 0x2df   : > { %v1605_v60 = vpop.eup %1604 }
 0x2e1   : > { %v1607_v63 = vpop.eup %1606  ;;  %1145 = vperm.xlu1 %1526, %v1605_v60  }
 0x2e2   : > { %1150 = vperm.xlu0 %1527, %v1607_v63  }
 0x2f3   : > { %v1429_v25 = vpop.f32.mrb[0].mxu1 }
 0x2f4   : > { %v928_v26 = vpop.f32.mrb[1].mxu1 }
 0x2f5   : > { %v1430_v27 = vpop.f32.mrb[2].mxu1 }
 0x2f6   : > { %v931_v28 = vpop.f32.mrb[3].mxu1 }
 0x304   : > { %v1433_v32 = vpop.f32.mrb[4].mxu1 }
 0x305   : > { %v944_v34 = vpop.f32.mrb[5].mxu1 }
 0x306   : > { %v1434_v0 = vpop.f32.mrb[6].mxu1 }
 0x307   : > { %v947_v30 = vpop.f32.mrb[7].mxu1 }
 0x333   : > { %v1064_v31 = vpop.permute.xlu1 %1063 }
 0x334   : > { %v1099_v45 = vmul.f32 %v1354_v39, %v1064_v31 }
 0x336   : > { %v1107_v49 = vsub.f32 %v1429_v25, %v1099_v45 }
 0x337   : > { %v1069_v36 = vpop.permute.xlu1 %1068  ;;  %v1054_v40 = vpop.permute.xlu0 %1053 }
 0x338   : > { %v1100_v29 = vmul.f32 %v1354_v39, %v1069_v36  ;;  %v1097_v11 = vmul.f32 %v1354_v39, %v1054_v40 }
 0x33a   : > { %v1108_v35 = vsub.f32 %v1430_v27, %v1100_v29  ;;  %v1105_v54 = vsub.f32 %v928_v26, %v1097_v11 }
 0x33b   : > { %v1059_v37 = vpop.permute.xlu1 %1058 }
 0x33c   : > { %v1098_v33 = vmul.f32 %v1354_v39, %v1059_v37 }
 0x33e   : > { %v1106_v47 = vsub.f32 %v931_v28, %v1098_v33 }
 0x344   : > { %v1084_v38 = vpop.permute.xlu1 %1083 }
 0x345   : > { %v1103_v61 = vmul.f32 %v1354_v39, %v1084_v38 }
 0x347   : > { %v1111_v16 = vsub.f32 %v1433_v32, %v1103_v61 }
 0x348   : > { %v1074_v2 = vpop.permute.xlu1 %1073 }
 0x349   : > { %v1101_v52 = vmul.f32 %v1354_v39, %v1074_v2 }
 0x34b   : > { %v1109_v4 = vsub.f32 %v944_v34, %v1101_v52 }
 0x34c   : > { %v1089_v41 = vpop.permute.xlu1 %1088  ;;  %v1131_v43 = vpop.permute.xlu0 %1130 }
 0x34d   : > { %v1156_v44 = vmul.f32 %v1131_v43, %v1108_v35  ;;  %v1104_v5 = vmul.f32 %v1354_v39, %v1089_v41 }
 0x34f   : > { %v1171_v46 = vadd.f32 %v1355_v42, %v1156_v44  ;;  %v1112_v1 = vsub.f32 %v1434_v0, %v1104_v5 }
 0x350   : > { %v1079_v48 = vpop.permute.xlu1 %1078  ;;  %v1121_v8 = vpop.permute.xlu0 %1120 }
 0x351   : > { %1179 = vst [vmem:[%s2183_s15 + $0x18] sm:$0xff] %v1171_v46  ;;  %v1154_v9 = vmul.f32 %v1121_v8, %v1106_v47  ;;  %v1102_v56 = vmul.f32 %v1354_v39, %v1079_v48 }
 0x353   : > { %v1169_v12 = vadd.f32 %v1355_v42, %v1154_v9  ;;  %v1110_v7 = vsub.f32 %v947_v30, %v1102_v56 }
 0x354   : > { %v1126_v50 = vpop.permute.xlu1 %1125 }
 0x355   : > { %1177 = vst [vmem:[%s2183_s15 + $0x8] sm:$0xff] %v1169_v12  ;;  %v1155_v51 = vmul.f32 %v1126_v50, %v1107_v49 }
 0x357   : > { %v1170_v53 = vadd.f32 %v1355_v42, %v1155_v51 }
 0x358   : > { %v1116_v58 = vpop.permute.xlu1 %1115 }
 0x359   : > { %1178 = vst [vmem:[%s2183_s15 + $0x10] sm:$0xff] %v1170_v53  ;;  %v1153_v59 = vmul.f32 %v1116_v58, %v1105_v54 }
 0x35b   : > { %v1168_v62 = vadd.f32 %v1355_v42, %v1153_v59 }
 0x35c   : > { %v1136_v6 = vpop.permute.xlu1 %1135 }
 0x35d   : > { %1176 = vst [vmem:[%s2183_s15] sm:$0xff] %v1168_v62  ;;  %v1157_v10 = vmul.f32 %v1136_v6, %v1109_v4  ;;  %v1141_v13 = vpop.permute.xlu0 %1140 }
 0x35e   : > { %v1158_v14 = vmul.f32 %v1141_v13, %v1110_v7 }
 0x35f   : > { %v1172_v15 = vadd.f32 %v1355_v42, %v1157_v10 }
 0x360   : > { %v1173_v17 = vadd.f32 %v1355_v42, %v1158_v14  ;;  %v1146_v18 = vpop.permute.xlu1 %1145 }
 0x361   : > { %1180 = vst [vmem:[%s2183_s15 + $0x20] sm:$0xff] %v1172_v15  ;;  %v1159_v3 = vmul.f32 %v1146_v18, %v1111_v16  ;;  %v1151_v19 = vpop.permute.xlu0 %1150 }
 0x362   : > { %1181 = vst [vmem:[%s2183_s15 + $0x28] sm:$0xff] %v1173_v17  ;;  %v1160_v20 = vmul.f32 %v1151_v19, %v1112_v1 }
 0x363   : > { %v1174_v21 = vadd.f32 %v1355_v42, %v1159_v3 }
 0x364   : > { %v1175_v22 = vadd.f32 %v1355_v42, %v1160_v20 }
 0x365   : > { %1182 = vst [vmem:[%s2183_s15 + $0x30] sm:$0xff] %v1174_v21 }
 0x366   : > { %1183 = vst [vmem:[%s2183_s15 + $0x38] sm:$0xff] %v1175_v22 }
 0x367   : > { %1707 = shalt.err (!%p1704_p11)
}
 0x368   : > { %s1708_s9 = scalar_lea.hbm %s2198_s27, 1024  ;;  %s1712_s8 = scalar_lea.hbm %s2255_s6, 2048 }
 0x369   : > { %p1709_p0 = scmp.ne.s32.totalorder %s2198_s27, %s1708_s9  ;;  %p1713_p6 = scmp.lt.u32.totalorder %s2198_s27, %s2255_s6 }
 0x36a   : > { %p1714_p7 = scmp.lt.u32.totalorder %s1712_s8, %s1708_s9  ;;  %p1716_p8 = scmp.lt.u32.totalorder %s1708_s9, %s2198_s27 }
 0x36b   : > { %p1710_p4 = pnand %p1709_p0, %p2272_p12 }
 0x36c   : > { %p1715_p2 = por %p1714_p7, %p1713_p6 }
 0x36d   : > { %p1711_p13 = pneg %p1710_p4 }
 0x36e   : > { %p1717_p1 = por %p1716_p8, %p1715_p2 }
 0x370   : > { %p1718_p10 = pnand %p1717_p1, %p1711_p13 }
 0x372   : > { %1721 = shalt.err (!%p1718_p10)
}
 0x373   : > { %s1792_s17 = smov 128   ;;  %s1793_s10 = smov 8  }
 0x374   : > { %1445 = dma.vmem_to_hbm [thread:$0]  (%p2272_p12), %s2192_s18, 1024, %s2198_s27, %s1185_s24, %s1792_s17, %s1792_s17, %s1793_s10  }
 0x375 PF: > { %s2273_s19 = sld [smem:[#allocation16_spill]]  ;;  %s1213_s30 = sand.u32 1, %s1760_s21  }
 0x376   : > { %p2275_p5 = scmp.ge.s32.totalorder %s1780_s26, 2  ;;  %s1214_s29 = scalar_lea.sflag [#allocation8], %s1213_s30 }
 0x37b   : > { %p2274_p3 = scmp.ne.s32.totalorder %s2273_s19, 0 }
 0x37d   : > { %p1459_p9 = pnand %p2275_p5, %p2274_p3 }
 0x37f   : > { %1755 = dma.done.wait (!%p1459_p9), %s1214_s29, 1024  }
 0x380   : > { %1757 = vsyncadd (!%p1459_p9), %s1214_s29, 4294966272  ;;  %s23_s26 = sadd.s32 1, %s1780_s26   ;;  %s2276_s21 = smov %s1764_s22 }
 0x381   : > { %p20_p11 = scmp.ge.s32.totalorder %s23_s26, 4   ;;  %s2277_s22 = smov %s1768_s23 }
 0x382   : > { %s2278_s23 = smov %s1971_s13  ;;  %s2279_s24 = smov %s1776_s25 }
 0x383   : > { %s2280_s25 = smov %s2282_s16  ;;  %22 = sbr.rel (!%p20_p11) target bundleno = 7 (0x7), region = 110 }
 0x38a   :  { %1219 = vsyncpa [#allocation7], 1 }
 0x38b   :  { %1221 = vsyncpa [#allocation7 + $0x1], 1 }
 0x38c   :  { %1222 = vsyncpa [#allocation10], 1 }
 0x38d   :  { %1223 = vsyncpa [#allocation8], 1 }
 0x38e   :  { %1225 = vsyncpa [#allocation8 + $0x1], 1 }

</bundles_post_ra>
